<compile_context>
chip_gen: v6e
topology: v6e:2x2x1
jax: 0.10.0
libtpu: 0.0.40
codegen_flags: <defaults>
</compile_context>

<pallas_src>
import jax
import jax.numpy as jnp
from jax.experimental import pallas as pl
from jax.experimental.pallas import tpu as pltpu

_NEG = -1e30  # fill for padded logit lanes; never wins max / contributes to exp-sum


def _bigram_loss_kernel(idx_ref, tgt_ref, emb_row_ref, logits_ref, loss_ref, acc_ref):
    """One grid step == one token.

    idx_ref   : (N,) int32 SMEM (scalar prefetch; consumed by the index_map gather)
    tgt_ref   : (N,) int32 SMEM (scalar prefetch)
    emb_row_ref: (1, 1, V_pad) f32 -- embedding row for token idx[n] (DMA-gathered)
    logits_ref : (1, 1, V_pad) f32 -- output logits row n
    loss_ref   : (1, 1) f32        -- mean cross-entropy, written at the last step
    acc_ref    : (1, 1) f32 VMEM scratch -- running sum of per-token NLL
    """
    del idx_ref  # only used by the BlockSpec index_map
    n = pl.program_id(0)
    num = pl.num_programs(0)

    @pl.when(n == 0)
    def _init():
        acc_ref[...] = jnp.zeros_like(acc_ref)

    # Embedding "lookup" is just the gathered row; copy straight to the output.
    logits_ref[...] = emb_row_ref[...]

    # Numerically stable log-softmax cross-entropy contribution of this token.
    row = emb_row_ref[0]                                     # (1, V_pad)
    tgt = tgt_ref[n]                                         # scalar int32 (SMEM read)
    m = jnp.max(row, axis=-1, keepdims=True)                 # (1, 1)
    lse = m + jnp.log(jnp.sum(jnp.exp(row - m), axis=-1, keepdims=True))
    lanes = jax.lax.broadcasted_iota(jnp.int32, row.shape, 1)
    tgt_logit = jnp.sum(jnp.where(lanes == tgt, row, 0.0), axis=-1, keepdims=True)
    acc_ref[...] = acc_ref[...] + (lse - tgt_logit)

    @pl.when(n == num - 1)
    def _finalize():
        loss_ref[...] = acc_ref[...] / num


def _bigram_logits_kernel(idx_ref, emb_row_ref, logits_ref):
    """Inference variant: pure gather, no softmax/loss work."""
    del idx_ref  # only used by the BlockSpec index_map
    logits_ref[...] = emb_row_ref[...]


def _pad_table(emb_table):
    V = emb_table.shape[0]
    V_pad = ((V + 127) // 128) * 128
    padded = jnp.full((V, V_pad), _NEG, jnp.float32)
    padded = padded.at[:, :V].set(emb_table.astype(jnp.float32))
    # (V, 1, V_pad): gathered blocks' last two dims equal full array dims.
    return padded.reshape(V, 1, V_pad), V_pad


def bigram_forward(idx, emb_table, targets=None):
    """Equivalent of BigramLanguageModel.forward.

    idx:       (B, T) int32 token ids
    emb_table: (V, V) float32 embedding table (nn.Embedding weight)
    targets:   optional (B, T) int32 token ids

    Returns (logits, loss):
      - targets is None: logits (B, T, V), loss None
      - else:            logits (B*T, V),  loss scalar (mean cross-entropy)
    """
    B, T = idx.shape
    V = emb_table.shape[0]
    N = B * T

    emb_3d, V_pad = _pad_table(emb_table)
    idx_flat = idx.reshape(N).astype(jnp.int32)

    if targets is not None:
        tgt_flat = targets.reshape(N).astype(jnp.int32)
        grid_spec = pltpu.PrefetchScalarGridSpec(
            num_scalar_prefetch=2,
            grid=(N,),
            in_specs=[
                # Row gather: DMA exactly the embedding row for token idx[n].
                pl.BlockSpec((1, 1, V_pad),
                             lambda n, idx_sm, tgt_sm: (idx_sm[n], 0, 0)),
            ],
            out_specs=(
                pl.BlockSpec((1, 1, V_pad),
                             lambda n, idx_sm, tgt_sm: (n, 0, 0)),
                # Loss block is resident across the whole grid (accumulator).
                pl.BlockSpec((1, 1), lambda n, idx_sm, tgt_sm: (0, 0)),
            ),
            scratch_shapes=[pltpu.VMEM((1, 1), jnp.float32)],
        )
        logits3d, loss = pl.pallas_call(
            _bigram_loss_kernel,
            grid_spec=grid_spec,
            out_shape=(
                jax.ShapeDtypeStruct((N, 1, V_pad), jnp.float32),
                jax.ShapeDtypeStruct((1, 1), jnp.float32),
            ),
            compiler_params=pltpu.CompilerParams(
                # Loss accumulation carries state across the grid -> arbitrary.
                dimension_semantics=("arbitrary",),
                vmem_limit_bytes=32 * 1024 * 1024,
            ),
            cost_estimate=pl.CostEstimate(
                flops=6 * N * V_pad,
                transcendentals=N * (V_pad + 1),
                bytes_accessed=2 * N * V_pad * 4 + 2 * N * 4 + 4,
            ),
        )(idx_flat, tgt_flat, emb_3d)
        logits = logits3d.reshape(N, V_pad)[:, :V]
        return logits, loss[0, 0]

    # Inference path (targets is None): skip all cross-entropy work.
    grid_spec = pltpu.PrefetchScalarGridSpec(
        num_scalar_prefetch=1,
        grid=(N,),
        in_specs=[
            pl.BlockSpec((1, 1, V_pad), lambda n, idx_sm: (idx_sm[n], 0, 0)),
        ],
        out_specs=pl.BlockSpec((1, 1, V_pad), lambda n, idx_sm: (n, 0, 0)),
    )
    logits3d = pl.pallas_call(
        _bigram_logits_kernel,
        grid_spec=grid_spec,
        out_shape=jax.ShapeDtypeStruct((N, 1, V_pad), jnp.float32),
        compiler_params=pltpu.CompilerParams(
            # Each token is independent -> shard across TensorCores (v7x megacore).
            dimension_semantics=("parallel",),
            vmem_limit_bytes=32 * 1024 * 1024,
        ),
        cost_estimate=pl.CostEstimate(
            flops=0,
            transcendentals=0,
            bytes_accessed=2 * N * V_pad * 4 + N * 4,
        ),
    )(idx_flat, emb_3d)
    logits = logits3d.reshape(N, V_pad)[:, :V].reshape(B, T, V)
    return logits, None


if __name__ == "__main__":
    # Small, deterministic setup: vocab of 65 chars, batch=2, seq=8.
    vocab_size = 65
    B, T = 2, 8

    key = jax.random.PRNGKey(0)
    k_emb, k_idx, k_tgt = jax.random.split(key, 3)

    emb_table = jax.random.normal(k_emb, (vocab_size, vocab_size), jnp.float32)
    idx = jax.random.randint(k_idx, (B, T), 0, vocab_size, jnp.int32)
    targets = jax.random.randint(k_tgt, (B, T), 0, vocab_size, jnp.int32)

    # Training-loss path.
    logits, loss = bigram_forward(idx, emb_table, targets)
    logits = jax.block_until_ready(logits)
    loss = jax.block_until_ready(loss)

    # Pure-JAX reference (embedding gather + mean cross-entropy).
    ref_logits = emb_table[idx.reshape(-1)]                               # (B*T, V)
    ref_lse = jax.scipy.special.logsumexp(ref_logits, axis=-1)            # (B*T,)
    ref_tgt = jnp.take_along_axis(
        ref_logits, targets.reshape(-1, 1), axis=-1)[:, 0]                # (B*T,)
    ref_loss = jnp.mean(ref_lse - ref_tgt)

    assert logits.shape == (B * T, vocab_size)
    assert jnp.allclose(logits, ref_logits, atol=1e-5, rtol=1e-5)
    assert jnp.allclose(loss, ref_loss, atol=1e-5, rtol=1e-5)

    # Inference (targets=None) path — logits-only kernel variant.
    gen_logits, gen_loss = bigram_forward(idx, emb_table)
    gen_logits = jax.block_until_ready(gen_logits)
    assert gen_loss is None
    assert gen_logits.shape == (B, T, vocab_size)
    assert jnp.allclose(gen_logits, ref_logits.reshape(B, T, vocab_size),
                        atol=1e-5, rtol=1e-5)

    # TODO(synk): `generate` uses torch.multinomial sampling in a host-side
    # autoregressive loop; not part of the kernel hot path, so not implemented.

    print("KERNEL_OK")
</pallas_src>

<mosaic_0001>
module attributes {stable_mosaic.version = 11 : i64} {
  func.func @_bigram_loss_kernel(%arg0: i32, %arg1: memref<16xi32, #tpu.memory_space<smem>>, %arg2: memref<16xi32, #tpu.memory_space<smem>>, %arg3: memref<1x1x128xf32, #tpu.memory_space<vmem>>, %arg4: memref<1x1x128xf32, #tpu.memory_space<vmem>>, %arg5: memref<1x1xf32, #tpu.memory_space<vmem>>, %arg6: memref<1x1xf32, #tpu.memory_space<vmem>>) attributes {dimension_semantics = [#tpu.dimension_semantics<arbitrary>], iteration_bounds = array<i64: 16>, scalar_prefetch = 2 : i64, scratch_operands = 1 : i64, tpu.core_type = #tpu.core_type<tc>, window_params = [{transform_indices = @transform_0, window_bounds = array<i64: 1, 1, 128>}, {transform_indices = @transform_1, window_bounds = array<i64: 1, 1, 128>}, {pipeline_mode = #tpu.pipeline_mode<synchronous>, transform_indices = @transform_2, window_bounds = array<i64: 1, 1>}]} {
    %c0_i32 = arith.constant 0 : i32
    %0 = arith.cmpi eq, %arg0, %c0_i32 : i32
    %1 = arith.extui %0 : i1 to i32
    %c0_i32_0 = arith.constant 0 : i32
    %2 = arith.cmpi ne, %1, %c0_i32_0 : i32
    scf.if %2 {
      %cst_17 = arith.constant 0.000000e+00 : f32
      %32 = vector.broadcast %cst_17 : f32 to vector<1x1xf32>
      %c0_18 = arith.constant 0 : index
      %c0_19 = arith.constant 0 : index
      %33 = vector.load %arg6[%c0_18, %c0_19] : memref<1x1xf32, #tpu.memory_space<vmem>>, vector<1x1xf32>
      tpu.vector_store %arg6[%c0_18, %c0_19], %32 {strides = array<i32>} : memref<1x1xf32, #tpu.memory_space<vmem>>, vector<1x1xf32>,
    } else {
    }
    %c0 = arith.constant 0 : index
    %c0_1 = arith.constant 0 : index
    %c0_2 = arith.constant 0 : index
    %3 = vector.load %arg3[%c0, %c0_1, %c0_2] : memref<1x1x128xf32, #tpu.memory_space<vmem>>, vector<1x1x128xf32>
    %c0_3 = arith.constant 0 : index
    %c0_4 = arith.constant 0 : index
    %c0_5 = arith.constant 0 : index
    %4 = vector.load %arg4[%c0_3, %c0_4, %c0_5] : memref<1x1x128xf32, #tpu.memory_space<vmem>>, vector<1x1x128xf32>
    tpu.vector_store %arg4[%c0_3, %c0_4, %c0_5], %3 {strides = array<i32>} : memref<1x1x128xf32, #tpu.memory_space<vmem>>, vector<1x1x128xf32>,
    %c0_6 = arith.constant 0 : index
    %c0_7 = arith.constant 0 : index
    %c0_8 = arith.constant 0 : index
    %5 = vector.load %arg3[%c0_6, %c0_7, %c0_8] : memref<1x1x128xf32, #tpu.memory_space<vmem>>, vector<1x1x128xf32>
    %6 = vector.shape_cast %5 : vector<1x1x128xf32> to vector<1x128xf32>
    %7 = arith.index_cast %arg0 : i32 to index
    %8 = memref.load %arg2[%7] : memref<16xi32, #tpu.memory_space<smem>>
    %cst = arith.constant dense<0xFF800000> : vector<1xf32>
    %9 = vector.multi_reduction <maximumf>, %6, %cst [1] : vector<1x128xf32> to vector<1xf32>
    %10 = vector.shape_cast %9 : vector<1xf32> to vector<1x1xf32>
    %11 = vector.broadcast %10 : vector<1x1xf32> to vector<1x128xf32>
    %12 = arith.subf %6, %11 : vector<1x128xf32>
    %13 = math.exp %12 : vector<1x128xf32>
    %cst_9 = arith.constant dense<0.000000e+00> : vector<1xf32>
    %14 = vector.multi_reduction <add>, %13, %cst_9 [1] : vector<1x128xf32> to vector<1xf32>
    %15 = vector.shape_cast %14 : vector<1xf32> to vector<1x1xf32>
    %16 = math.log %15 : vector<1x1xf32>
    %17 = arith.addf %10, %16 : vector<1x1xf32>
    %18 = tpu.iota {dimensions = array<i32: 1>} : vector<1x128xi32>
    %19 = vector.broadcast %8 : i32 to vector<1x128xi32>
    %20 = arith.cmpi eq, %18, %19 : vector<1x128xi32>
    %cst_10 = arith.constant 0.000000e+00 : f32
    %21 = vector.broadcast %cst_10 : f32 to vector<1x128xf32>
    %22 = arith.select %20, %6, %21 : vector<1x128xi1>, vector<1x128xf32>
    %cst_11 = arith.constant dense<0.000000e+00> : vector<1xf32>
    %23 = vector.multi_reduction <add>, %22, %cst_11 [1] : vector<1x128xf32> to vector<1xf32>
    %24 = vector.shape_cast %23 : vector<1xf32> to vector<1x1xf32>
    %c0_12 = arith.constant 0 : index
    %c0_13 = arith.constant 0 : index
    %25 = vector.load %arg6[%c0_12, %c0_13] : memref<1x1xf32, #tpu.memory_space<vmem>>, vector<1x1xf32>
    %26 = arith.subf %17, %24 : vector<1x1xf32>
    %27 = arith.addf %25, %26 : vector<1x1xf32>
    %c0_14 = arith.constant 0 : index
    %c0_15 = arith.constant 0 : index
    %28 = vector.load %arg6[%c0_14, %c0_15] : memref<1x1xf32, #tpu.memory_space<vmem>>, vector<1x1xf32>
    tpu.vector_store %arg6[%c0_14, %c0_15], %27 {strides = array<i32>} : memref<1x1xf32, #tpu.memory_space<vmem>>, vector<1x1xf32>,
    %c15_i32 = arith.constant 15 : i32
    %29 = arith.cmpi eq, %arg0, %c15_i32 : i32
    %30 = arith.extui %29 : i1 to i32
    %c0_i32_16 = arith.constant 0 : i32
    %31 = arith.cmpi ne, %30, %c0_i32_16 : i32
    scf.if %31 {
      %c0_17 = arith.constant 0 : index
      %c0_18 = arith.constant 0 : index
      %32 = vector.load %arg6[%c0_17, %c0_18] : memref<1x1xf32, #tpu.memory_space<vmem>>, vector<1x1xf32>
      %cst_19 = arith.constant 1.600000e+01 : f32
      %33 = vector.broadcast %cst_19 : f32 to vector<1x1xf32>
      %34 = arith.divf %32, %33 : vector<1x1xf32>
      %c0_20 = arith.constant 0 : index
      %c0_21 = arith.constant 0 : index
      %35 = vector.load %arg5[%c0_20, %c0_21] : memref<1x1xf32, #tpu.memory_space<vmem>>, vector<1x1xf32>
      tpu.vector_store %arg5[%c0_20, %c0_21], %34 {strides = array<i32>} : memref<1x1xf32, #tpu.memory_space<vmem>>, vector<1x1xf32>,
    } else {
    }
    return
  }
  func.func @transform_0(%arg0: i32, %arg1: memref<16xi32, #tpu.memory_space<smem>>, %arg2: memref<16xi32, #tpu.memory_space<smem>>) -> (i32, i32, i32) {
    %0 = arith.index_cast %arg0 : i32 to index
    %1 = memref.load %arg1[%0] : memref<16xi32, #tpu.memory_space<smem>>
    %c0_i32 = arith.constant 0 : i32
    %c0_i32_0 = arith.constant 0 : i32
    %c0_i32_1 = arith.constant 0 : i32
    return %1, %c0_i32, %c0_i32_0 : i32, i32, i32
  }
  func.func @transform_1(%arg0: i32, %arg1: memref<16xi32, #tpu.memory_space<smem>>, %arg2: memref<16xi32, #tpu.memory_space<smem>>) -> (i32, i32, i32) {
    %c0_i32 = arith.constant 0 : i32
    %c0_i32_0 = arith.constant 0 : i32
    %c0_i32_1 = arith.constant 0 : i32
    return %arg0, %c0_i32, %c0_i32_0 : i32, i32, i32
  }
  func.func @transform_2(%arg0: i32, %arg1: memref<16xi32, #tpu.memory_space<smem>>, %arg2: memref<16xi32, #tpu.memory_space<smem>>) -> (i32, i32) {
    %c0_i32 = arith.constant 0 : i32
    %c0_i32_0 = arith.constant 0 : i32
    %c0_i32_1 = arith.constant 0 : i32
    return %c0_i32, %c0_i32_0 : i32, i32
  }
}

</mosaic_0001>

<bundles_post_ra>
// kernel: tpu_custom_call.1
= control target key start
LH: loop header
LB: loop body
LE: loop exit
PB: predicated region body
PF: predicated region fallthrough
CT: control target
= control target key end

     0   :  { %s578_s15 = smov [#allocation4]   ;;  %s808_s0 = inlined_call_operand.hbm [shape: s32[16], index: 0, kind: input, shape index: {}]   ;;  %s809_s2 = inlined_call_operand.hbm [shape: f32[65,1,128], index: 2, kind: input, shape index: {}]   ;;  %s810_s3 = inlined_call_operand.hbm [shape: f32[16,1,128], index: 3, kind: output, shape index: {0}]   ;;  %s811_s4 = inlined_call_operand.hbm [shape: f32[1,1], index: 4, kind: output, shape index: {1}]   ;;  %s812_s1 = inlined_call_operand.vmem [shape: s32[16], index: 1, kind: input, shape index: {}]  }
   0x1   :  { %11 = dma.hbm_to_smem %s808_s0, 16, %s578_s15, [#allocation3] }
   0x2   :  { %s12_s20 = sshll.u32 %s812_s1, 4  ;;  %s13_s20 = int_to_ptr.vmem [resolvable:$true] %s12_s20 }
   0x3   :  { %s418_s21 = scalar_lea.vmem %s13_s20, 16  ;;  %p423_p1 = scmp.lt.s32.totalorder %s13_s20, %s13_s20 }
   0x4   :  { %p419_p0 = scmp.ne.s32.totalorder %s13_s20, %s418_s21  ;;  %p424_p2 = scmp.lt.s32.totalorder %s418_s21, %s418_s21 }
   0x6   :  { %p425_p3 = por %p424_p2, %p423_p1 }
   0x8   :  { %p426_p4 = pnand %p425_p3, %p419_p0 }
   0xa   :  { %429 = shalt.err (!%p426_p4)  }
   0xb   :  { %s579_s22 = smov [#allocation5]  }
   0xc   :  { %15 = dma.vmem_to_smem %s13_s20, 16, %s579_s22, [#allocation3] }
   0xd   :  { %536 = dma.done.wait [#allocation3], 32 }
   0xe   :  { %537 = vsyncadd [#allocation3], 4294967264 }
   0xf   :  { %17 = sfence }
  0x10   :  { %18 = vsyncpa [#allocation7], 0 }
  0x11   :  { %20 = vsyncpa [#allocation7 + $0x1], 0 }
  0x12   :  { %21 = vsyncpa [#allocation8], 0 }
  0x13   :  { %23 = vsyncpa [#allocation8 + $0x1], 0 }
  0x14   :  { %24 = vsyncpa [#allocation11], 0  ;;  %s615_s0 = smov 0   ;;  %s617_s1 = smov 0  }
  0x15   :  { %s619_s23 = smov 0   ;;  %s621_s24 = smov 0  }
  0x16   :  { %s623_s25 = smov 0   ;;  %s625_s26 = smov 0  }
  0x17   :  { %s627_s27 = smov 0  }
  0x18 LB: > { %s649_s28 = sadd.s32 4294967295, %s576_s27   ;;  %s310_s29 = sadd.s32 4294967294, %s576_s27   ;;  %s576_s27 = sphi %s627_s27, %s838_s27   ;;  %s572_s26 = sphi %s625_s26, %s837_s26   ;;  %s568_s25 = sphi %s623_s25, %s836_s25   ;;  %s564_s24 = sphi %s621_s24, %s835_s24   ;;  %s560_s23 = sphi %s619_s23, %s834_s23   ;;  %s556_s1 = sphi %s617_s1, %s833_s1   ;;  %s552_s0 = sphi %s615_s0, %s832_s0  }
  0x19   : > { %s653_s30 = sadd.s32 1, %s576_s27   ;;  %s34_s5 = sld [smem:[#allocation4 + %s576_s27]] }
  0x1a   : > { %s35_s6 = sld [smem:[#allocation4 + %s653_s30]]  ;;  %s39_s7 = sadd.s32 1, %s572_s26 }
  0x1b   : > { %p46_p5 = scmp.ne.s32.totalorder %s572_s26, %s568_s25  ;;  %p47_p6 = scmp.eq.s32.totalorder %s576_s27, 0 }
  0x1c   : > { %p52_p7 = scmp.ne.s32.totalorder %s568_s25, %s564_s24  ;;  %p53_p8 = scmp.eq.s32.totalorder %s649_s28, 0 }
  0x1d   : > { %p663_p9 = por %p47_p6, %p46_p5  ;;  %s62_s9 = ssub.s32 %s576_s27, %s653_s30 }
  0x1e   : > { %p669_p10 = por %p53_p8, %p52_p7  ;;  %p63_p11 = scmp.eq.s32.totalorder %s62_s9, 0 }
  0x1f   : > { %s65_s11 = sadd.s32 1, %s560_s23  ;;  %p75_p12 = scmp.ne.s32.totalorder %s560_s23, %s556_s1 }
  0x20   : > { %s817_s10 = scalar_select %p669_p10, 1, 0 }
  0x21   : > { %s36_s12 = ssub.s32 %s34_s5, %s35_s6  ;;  %p813_p13 = scmp.eq.s32.totalorder %s649_s28, 15 }
  0x22   : > { %p37_p0 = scmp.eq.s32.totalorder %s36_s12, 0  ;;  %p81_p1 = scmp.ne.s32.totalorder %s556_s1, %s552_s0 }
  0x23   : > { %s680_s13 = scalar_select %p63_p11, %s560_s23, %s65_s11  }
  0x24   : > { %s683_s14 = scalar_select %p37_p0, %s572_s26, %s39_s7  }
  0x25   : > { %p687_p2 = por %p813_p13, %p75_p12  ;;  %p82_p3 = scmp.eq.s32.totalorder %s310_s29, 15 }
  0x26   : > { %818 = sst [smem:[#allocation18_spill]] %s683_s14  ;;  %p342_p5 = scmp.lt.s32.totalorder %s576_s27, 16 }
  0x27   : > { %s819_s15 = scalar_select %p687_p2, 1, 0 }
  0x28   : > { %p691_p4 = por %p82_p3, %p81_p1  ;;  %s123_s17 = sand.u32 1, %s572_s26  }
  0x29   : > { %s322_s18 = scalar_select %p663_p9, [#allocation4], [#allocation12] }
  0x2a   : > { %s820_s16 = scalar_select %p691_p4, 1, 0 }
  0x2b   : > { %s323_s19 = scalar_select %p663_p9, %s576_s27, 0 }
  0x2c   : > { %s840_s18 = smov (!%p342_p5, %s322_s18), [#allocation13]  ;;  %p704_p6 = pnand %p342_p5, %p663_p9 }
  0x2d   : > { %s842_s19 = smov (!%p342_p5, %s323_s19), 0  ;;  %p314_p7 = scmp.ge.s32.totalorder %s576_s27, 1 }
  0x2e   : > { %s127_s21 = sld [smem:[%s840_s18 + %s842_s19]]  ;;  %s126_s22 = scalar_lea.vmem [#allocation6], %s123_s17 }
  0x2f   : > { %s134_s24 = sshll.u32 %s126_s22, 4  ;;  %p139_p8 = scmp.lt.s32.totalorder %s576_s27, 17  ;;  %s714_s24 = int_to_ptr.vmem [resolvable:$true] %s134_s24 }
  0x30   : > { %s124_s9 = scalar_lea.sflag [#allocation7], %s123_s17  ;;  %p432_p12 = pneg %p704_p6 }
  0x31   : > { %p710_p11 = pnand %p314_p7, %p139_p8  ;;  %s435_s19 = scalar_lea.hbm %s809_s2, 1040 }
  0x33   : > { %s822_s29 = scalar_select %p710_p11, 1, 0 }
  0x34   : > { %s313_s5 = sshll.u32 %s127_s21, 4 }
  0x35   : > { %s132_s8 = scalar_lea.hbm %s809_s2, %s313_s5 }
  0x36   : > { %s430_s11 = scalar_lea.hbm %s132_s8, 16  ;;  %p436_p3 = scmp.lt.s32.totalorder %s132_s8, %s809_s2 }
  0x37   : > { %p431_p9 = scmp.ne.s32.totalorder %s132_s8, %s430_s11  ;;  %p437_p5 = scmp.lt.s32.totalorder %s435_s19, %s430_s11 }
  0x39   : > { %p433_p0 = pnand %p432_p12, %p431_p9  ;;  %p438_p7 = por %p437_p5, %p436_p3 }
  0x3b   : > { %p434_p1 = pneg %p433_p0 }
  0x3d   : > { %p439_p8 = pnand %p438_p7, %p434_p1 }
  0x3f   : > { %442 = shalt.err (!%p439_p8)
}
  0x40   : > { %s443_s17 = scalar_lea.vmem %s714_s24, 16  ;;  %s580_s21 = smov [#allocation6]  }
  0x41   : > { %p444_p13 = scmp.ne.s32.totalorder %s714_s24, %s443_s17  ;;  %s448_s5 = sshll.u32 %s580_s21, 4  ;;  %s449_s5 = int_to_ptr.vmem [resolvable:$false] %s448_s5 }
  0x42   : > { %s450_s6 = scalar_lea.vmem %s449_s5, 32  ;;  %p451_p0 = scmp.lt.s32.totalorder %s714_s24, %s449_s5 }
  0x43   : > { %p446_p4 = pnand %p444_p13, %p432_p12  ;;  %p452_p2 = scmp.lt.s32.totalorder %s450_s6, %s443_s17 }
  0x45   : > { %p447_p9 = pneg %p446_p4  ;;  %p453_p10 = por %p452_p2, %p451_p0 }
  0x47   : > { %p454_p11 = pnand %p453_p10, %p447_p9 }
  0x49   : > { %457 = shalt.err (!%p454_p11)
}
  0x4a   : > { %337 = dma.hbm_to_vmem [thread:$0]  (!%p704_p6), %s132_s8, 16, %s714_s24, %s124_s9  }
  0x4b   : > { %p823_p1 = scmp.ne.s32.totalorder %s822_s29, 0 }
  0x4c   : > { %s145_s14 = sand.u32 (!%p823_p1), 1, %s568_s25   ;;  %p824_p13 = scmp.ne.s32.totalorder (!%p823_p1), %s817_s10, 0 }
  0x4d   : > { %143 = sbr.rel (%p823_p1) target bundleno = 465 (0x1d1), region = 24  ;;  %s146_s7 = scalar_lea.sflag (!%p823_p1), [#allocation7], %s145_s14 }
  0x4e   : > { %s148_s11 = scalar_lea.vmem (!%p823_p1), [#allocation6], %s145_s14 }
  0x52   : > { %539 = dma.done.wait (%p824_p13), %s146_s7, 16  }
  0x53   : > { %541 = vsyncadd (%p824_p13), %s146_s7, 4294967280  ;;  %s163_s12 = sand.u32 1, %s556_s1   ;;  %p315_p10 = scmp.ne.s32.totalorder %s649_s28, 0 }
  0x54   : > { %s743_s20 = scalar_lea.vmem [#allocation9], %s163_s12 }
  0x55   : > { %171 = sbr.rel (%p315_p10) target bundleno = 92 (0x5c), region = 32 }
  0x5a   : > { %vm172_vm0 = vcmask 0   ;;  %v581_v0 = vmov 0.0  }
  0x5b   : > { %173 = vst.msk [vmem:[#allocation2] sm:$0x1] %vm172_vm0, %v581_v0 }
  0x5c PF: > { %v176_v1 = vld [vmem:[%s148_s11] sm:$0x1]  ;;  %vm178_vm1 = vcmask 1040384   ;;  %s177_s10 = sld [smem:[#allocation5 + %s649_s28]]  ;;  %v191_v3 = vlaneseq  ;;  %vm202_vm3 = vcmask 0   ;;  %p316_p2 = scmp.ne.s32.totalorder %s649_s28, 15 }
  0x5d   : > { %v179_v2 = vsel %vm178_vm1, %v176_v1, -inf  ;;  %v174_v13 = vld [vmem:[%s148_s11] sm:$0x1] }
  0x5e   : > { %180 = vmax.xlane.f32.xlu0 %v179_v2  ;;  %v192_v4 = vand.u32 127, %v191_v3  ;;  %175 = vst [vmem:[%s743_s20] sm:$0x1] %v174_v13 }
  0x62   : > { %v193_v5 = vstv %s177_s10  ;;  %v199_v19 = vld [vmem:[#allocation2] sm:$0x1] }
  0x63   : > { %vm194_vm2 = vcmp.eq.s32.totalorder %v192_v4, %v193_v5 }
  0x64   : > { %v195_v6 = vsel %vm194_vm2, %v176_v1, 0.0 }
  0x65   : > { %v196_v7 = vsel %vm178_vm1, %v195_v6, 0.0 }
  0x66   : > { %197 = vadd.xlane.f32.xlu1 %v196_v7 }
  0xe7   : > { %v181_v8 = vpop.xlane.xlu0 %180 }
  0xe8   : > { %v182_v9 = vsub.f32 %v176_v1, %v181_v8 }
  0xea   : > { %v183_v10 = vmul.f32 1.442695, %v182_v9 }
  0xec   : > { %406 = vpow2.f32 %v183_v10 }
  0xef   : > { %v198_v17 = vpop.xlane.xlu1 %197 }
  0xf9   : > { %v407_v11 = vpop.eup %406 }
  0xfa   : > { %v185_v12 = vsel %vm178_vm1, %v407_v11, 0.0 }
  0xfb   : > { %186 = vadd.xlane.f32.xlu0 %v185_v12 }
 0x184   : > { %v187_v14 = vpop.xlane.xlu0 %186 }
 0x185   : > { %408 = vlog2.f32 %v187_v14 }
 0x192   : > { %v409_v15 = vpop.eup %408 }
 0x193   : > { %v189_v16 = vmul.f32 0.6931472, %v409_v15 }
 0x195   : > { %v190_v18 = vadd.f32 %v189_v16, %v181_v8 }
 0x197   : > { %v200_v20 = vsub.f32 %v190_v18, %v198_v17  ;;  %207 = sbr.rel (%p316_p2) target bundleno = 422 (0x1a6), region = 36 }
 0x199   : > { %v201_v21 = vadd.f32 %v200_v20, %v199_v19 }
 0x19b   : > { %203 = vst.msk [vmem:[#allocation2] sm:$0x1] %vm202_vm3, %v201_v21 }
 0x1a2   : > { %v208_v22 = vld [vmem:[#allocation2] sm:$0x1] }
 0x1a3   : > { %v210_v23 = vmul.f32 0.0625, %v208_v22 }
 0x1a5   : > { %211 = vst.msk [vmem:[#allocation10] sm:$0x1] %vm202_vm3, %v210_v23 }
 0x1a6 PF: > { %s317_s24 = sshll.u32 %s649_s28, 4  ;;  %s225_s18 = sshll.u32 %s743_s20, 4  ;;  %s226_s18 = int_to_ptr.vmem [resolvable:$true] %s225_s18 }
 0x1a7   : > { %s223_s9 = scalar_lea.hbm %s810_s3, %s317_s24  ;;  %s213_s19 = scalar_lea.sflag [#allocation8], %s163_s12 }
 0x1a8   : > { %s458_s22 = scalar_lea.vmem %s226_s18, 16  ;;  %p825_p6 = scmp.ne.s32.totalorder %s819_s15, 0 }
 0x1a9   : > { %p459_p4 = scmp.ne.s32.totalorder %s226_s18, %s458_s22  ;;  %s582_s17 = smov [#allocation9]  }
 0x1aa   : > { %s462_s21 = sshll.u32 %s582_s17, 4  ;;  %s463_s21 = int_to_ptr.vmem [resolvable:$false] %s462_s21 }
 0x1ab   : > { %p460_p11 = pnand %p459_p4, %p825_p6  ;;  %s464_s5 = scalar_lea.vmem %s463_s21, 32 }
 0x1ac   : > { %p465_p3 = scmp.lt.s32.totalorder %s226_s18, %s463_s21  ;;  %p466_p5 = scmp.lt.s32.totalorder %s464_s5, %s458_s22 }
 0x1ad   : > { %p461_p12 = pneg %p460_p11 }
 0x1ae   : > { %p467_p7 = por %p466_p5, %p465_p3 }
 0x1b0   : > { %p468_p8 = pnand %p467_p7, %p461_p12 }
 0x1b2   : > { %471 = shalt.err (!%p468_p8)
}
 0x1b3   : > { %s472_s6 = scalar_lea.hbm %s223_s9, 16  ;;  %s476_s11 = scalar_lea.hbm %s810_s3, 256 }
 0x1b4   : > { %p473_p9 = scmp.ne.s32.totalorder %s223_s9, %s472_s6  ;;  %p477_p13 = scmp.lt.s32.totalorder %s223_s9, %s810_s3 }
 0x1b5   : > { %p478_p10 = scmp.lt.s32.totalorder %s476_s11, %s472_s6 }
 0x1b6   : > { %p474_p0 = pnand %p473_p9, %p825_p6 }
 0x1b7   : > { %p479_p2 = por %p478_p10, %p477_p13 }
 0x1b8   : > { %p475_p1 = pneg %p474_p0 }
 0x1ba   : > { %p480_p4 = pnand %p479_p2, %p475_p1 }
 0x1bc   : > { %483 = shalt.err (!%p480_p4)
}
 0x1bd   : > { %326 = dma.vmem_to_hbm [thread:$0]  (%p825_p6), %s226_s18, 16, %s223_s9, %s213_s19  }
 0x1be   : > { %s583_s10 = smov [#allocation10]   ;;  %p826_p12 = scmp.eq.s32.totalorder %s649_s28, 15 }
 0x1bf   : > { %s236_s24 = sshll.u32 %s583_s10, 4  ;;  %s237_s24 = int_to_ptr.vmem [resolvable:$true] %s236_s24 }
 0x1c0   : > { %s484_s29 = scalar_lea.vmem %s237_s24, 16  ;;  %s490_s8 = scalar_lea.vmem %s237_s24, 32 }
 0x1c1   : > { %p485_p11 = scmp.ne.s32.totalorder %s237_s24, %s484_s29  ;;  %p491_p7 = scmp.lt.s32.totalorder %s237_s24, %s237_s24 }
 0x1c2   : > { %p492_p8 = scmp.lt.s32.totalorder %s490_s8, %s484_s29 }
 0x1c3   : > { %p486_p3 = pnand %p485_p11, %p826_p12 }
 0x1c4   : > { %p493_p9 = por %p492_p8, %p491_p7 }
 0x1c5   : > { %p487_p5 = pneg %p486_p3 }
 0x1c7   : > { %p494_p0 = pnand %p493_p9, %p487_p5 }
 0x1c9   : > { %497 = shalt.err (!%p494_p0)
}
 0x1ca   : > { %p827_p1 = pmov %p826_p12 }
 0x1cc   : > { %328 = dma.vmem_to_hbm [thread:$0]  (%p827_p1), %s237_s24, 16, %s811_s4, [#allocation11]  }
 0x1cd   : > { %p828_p6 = pmov %p827_p1 }
 0x1ce   : > { %p829_p13 = pmov %p827_p1 }
 0x1cf   : > { %543 = dma.done.wait (%p828_p6), [#allocation11], 16  }
 0x1d0   : > { %545 = vsyncadd (%p829_p13), [#allocation11], 4294967280 }
 0x1d1 PF: > { %p345_p10 = scmp.ge.s32.totalorder %s576_s27, 2  ;;  %s252_s9 = sand.u32 1, %s552_s0  }
 0x1d2   : > { %p830_p2 = scmp.ne.s32.totalorder %s820_s16, 0  ;;  %s253_s18 = scalar_lea.sflag [#allocation8], %s252_s9 }
 0x1d4   : > { %p339_p4 = pnand %p345_p10, %p830_p2 }
 0x1d6   : > { %p340_p11 = pneg %p339_p4 }
 0x1d8   : > { %547 = dma.done.wait (%p340_p11), %s253_s18, 16  }
 0x1d9   : > { %549 = vsyncadd (%p340_p11), %s253_s18, 4294967280  ;;  %s831_s28 = sld [smem:[#allocation18_spill]]  ;;  %p27_p12 = scmp.ge.s32.totalorder %s653_s30, 18  }
 0x1da   : > { %s832_s0 = smov %s556_s1  ;;  %s833_s1 = smov %s560_s23 }
 0x1db   : > { %s834_s23 = smov %s680_s13  ;;  %s835_s24 = smov %s568_s25 }
 0x1dc   : > { %s836_s25 = smov %s572_s26  ;;  %s838_s27 = smov %s653_s30 }
 0x1dd   :  { %29 = sbr.rel (!%p27_p12) target bundleno = 24 (0x18), region = 85 }
 0x1df   : > { %s837_s26 = smov %s831_s28 }
 0x1e2   :  { %257 = vsyncpa [#allocation7], 1 }
 0x1e3   :  { %259 = vsyncpa [#allocation7 + $0x1], 1 }
 0x1e4   :  { %260 = vsyncpa [#allocation8], 1 }
 0x1e5   :  { %262 = vsyncpa [#allocation8 + $0x1], 1 }
 0x1e6   :  { %263 = vsyncpa [#allocation11], 1 }

</bundles_post_ra>
